<compile_context>
chip_gen: v7x
topology: tpu7x:2x2x1
jax: 0.10.0
libtpu: 0.0.40
codegen_flags: <defaults>
</compile_context>

<pallas_src>
import functools

import jax
import jax.numpy as jnp
from jax.experimental import pallas as pl
from jax.experimental.pallas import tpu as pltpu

_BN_EPS = 1e-5


def _round_up(x, m):
    return (x + m - 1) // m * m


def _block_kernel(phf_ref, mask_ref, coef_ref, g1_ref, b1_ref, w2_ref,
                  g2_ref, b2_ref, out_ref, *, c_in, wp, cnt):
    # phf_ref : (2, 2*Cin, Lp) stride-2 phase split; leading dim = row parity p,
    #                          rows r = q*Cin + c, lanes = flattened (n, ii, jj)
    # mask_ref: (1, Lp)        1.0 at valid output positions, else 0.0
    # coef_ref: (2*Cin, 6)     depthwise coeffs; col 2*kh -> tap (kh, kw=q),
    #                          col 2*kh+1 -> tap (kh, kw=2) (q=0 half only)
    # g1/b1   : (Cin, 1)       BN1 affine;  w2_ref: (Cout, Cin) pointwise weights
    # g2/b2   : (Cout, 1)      BN2 affine;  out_ref: (Cout, Lp)  lane-dense store
    lp = out_ref.shape[-1]
    inv_cnt = 1.0 / cnt
    mask = mask_ref[...]                                   # (1, Lp)

    slab0 = phf_ref[0]                                     # (2*Cin, Lp), aligned
    slab1 = phf_ref[1]
    slabs = (slab0, slab1)

    # ---- depthwise 3x3 / stride-2: per kh, two in-register rolled taps -----
    acc8 = jnp.zeros_like(slab0)                           # (2*Cin, Lp)
    for kh in range(3):
        p, dh = kh & 1, kh >> 1
        base = slabs[p]
        off_a = dh * wp                                    # {0, 0, wp}
        base_a = base if off_a == 0 else pltpu.roll(base, lp - off_a, axis=1)
        base_b = pltpu.roll(base, lp - (off_a + 1), axis=1)
        c_a = coef_ref[:, 2 * kh:2 * kh + 1]               # (2*Cin, 1)
        c_b = coef_ref[:, 2 * kh + 1:2 * kh + 2]
        acc8 = acc8 + c_a * base_a + c_b * base_b
    # fold the two jj-parity halves -> per-channel conv result (Cin, Lp)
    acc = acc8[:c_in] + acc8[c_in:2 * c_in]

    # ---- BatchNorm2d #1 (batch stats, fused single pass) + ReLU -------------
    am = acc * mask                                        # halo/pad cols -> 0
    s1 = jnp.sum(am, axis=-1, keepdims=True)               # (Cin, 1)
    q1 = jnp.sum(am * am, axis=-1, keepdims=True)
    m1 = s1 * inv_cnt
    v1 = q1 * inv_cnt - m1 * m1
    h = jnp.maximum(
        (am - m1) * jax.lax.rsqrt(v1 + _BN_EPS) * g1_ref[...] + b1_ref[...],
        0.0)
    h = h * mask                     # zero halo columns before the 1x1 conv

    # ---- pointwise 1x1 conv: Cin unrolled broadcast FMAs (MXU ~empty at K=4)
    w2 = w2_ref[...]                                       # (Cout, Cin)
    y = w2[:, 0:1] * h[0:1, :]                             # (Cout, Lp)
    for c in range(1, c_in):
        y = y + w2[:, c:c + 1] * h[c:c + 1, :]

    # ---- BatchNorm2d #2 + ReLU (y is exactly 0 on halo/pad columns) --------
    s2 = jnp.sum(y, axis=-1, keepdims=True)                # (Cout, 1)
    q2 = jnp.sum(y * y, axis=-1, keepdims=True)
    m2 = s2 * inv_cnt
    v2 = q2 * inv_cnt - m2 * m2
    out = jnp.maximum(
        (y - m2) * jax.lax.rsqrt(v2 + _BN_EPS) * g2_ref[...] + b2_ref[...],
        0.0)
    out_ref[...] = out.astype(out_ref.dtype)


def block_forward(x_nchw, wdw, g1, b1, wpw, g2, b2):
    """x_nchw: (N, Cin, H, W); wdw: (3,3,Cin); wpw: (Cin, Cout). Returns NCHW."""
    n, c_in, h, w = x_nchw.shape
    assert h % 2 == 0 and w % 2 == 0, "stride-2 path assumes even spatial dims"
    ho, wo = h // 2, w // 2
    hp, wp = ho + 1, wo + 1                      # (H+2)//2, (W+2)//2
    c_out = wpw.shape[1]
    l = n * hp * wp                              # flattened positions (incl. halo)
    lp = _round_up(l, 128)                       # lane-dense padded length

    # ---- layout glue (pure indexing, ~1x data; see TODO about in-kernel DMA)
    x = x_nchw.astype(jnp.float32)
    xp = jnp.pad(x, ((0, 0), (0, 0), (1, 1), (1, 1)))       # padding=1
    ph = xp.reshape(n, c_in, hp, 2, wp, 2)                  # n c a p b q
    ph = jnp.transpose(ph, (3, 5, 1, 0, 2, 4))              # (p, q, c, n, a, b)
    phf = ph.reshape(2, 2 * c_in, l)                        # rows r = q*Cin + c
    phf = jnp.pad(phf, ((0, 0), (0, 0), (0, lp - l)))       # (2, 2*Cin, Lp)

    # valid-position mask over the padded flat axis
    idx = jnp.arange(lp)
    r = idx % (hp * wp)
    mask = ((idx < l) & ((r // wp) < ho) & ((r % wp) < wo))
    mask = mask.astype(jnp.float32).reshape(1, lp)

    # depthwise coefficients arranged to match the (q*Cin + c) sublane layout
    coef_a = jnp.concatenate([wdw[:, 0, :], wdw[:, 1, :]], axis=-1)   # (3, 2*Cin)
    coef_b = jnp.concatenate([wdw[:, 2, :], jnp.zeros_like(wdw[:, 2, :])], axis=-1)
    coef = jnp.stack([coef_a, coef_b], axis=1).reshape(6, 2 * c_in).T  # (2*Cin, 6)

    vmem = pl.BlockSpec(memory_space=pltpu.MemorySpace.VMEM)
    out_flat = pl.pallas_call(
        functools.partial(_block_kernel, c_in=c_in, wp=wp, cnt=float(n * ho * wo)),
        out_shape=jax.ShapeDtypeStruct((c_out, lp), jnp.float32),
        in_specs=[vmem] * 8,
        out_specs=vmem,
    )(phf, mask, coef,
      g1.reshape(c_in, 1), b1.reshape(c_in, 1),
      wpw.T,                                    # (Cout, Cin)
      g2.reshape(c_out, 1), b2.reshape(c_out, 1))

    # strip pad/halo columns, back to NCHW (tiny output; pure XLA glue)
    out = out_flat[:, :l].reshape(c_out, n, hp, wp)[:, :, :ho, :wo]
    return jnp.transpose(out, (1, 0, 2, 3))


def reference_block(x_nchw, wdw, g1, b1, wpw, g2, b2):
    """Pure-JAX reference mirroring the PyTorch forward (training-mode BN)."""
    c_in = wdw.shape[-1]
    x = jnp.transpose(x_nchw, (0, 2, 3, 1)).astype(jnp.float32)
    dw_kernel = wdw[:, :, None, :]      # (3,3,1,Cin) HWIO, feature_group_count=Cin
    h = jax.lax.conv_general_dilated(
        x, dw_kernel, window_strides=(2, 2), padding=((1, 1), (1, 1)),
        dimension_numbers=("NHWC", "HWIO", "NHWC"), feature_group_count=c_in)

    def bn_relu(z, g, b):
        m = jnp.mean(z, axis=(0, 1, 2), keepdims=True)
        v = jnp.mean((z - m) ** 2, axis=(0, 1, 2), keepdims=True)
        return jnp.maximum((z - m) / jnp.sqrt(v + _BN_EPS) * g + b, 0.0)

    h = bn_relu(h, g1, b1)
    y = jnp.einsum("nhwc,co->nhwo", h, wpw)
    y = bn_relu(y, g2, b2)
    return jnp.transpose(y, (0, 3, 1, 2))


if __name__ == "__main__":
    key = jax.random.PRNGKey(0)
    kx, k1, k2, k3, k4, k5, k6 = jax.random.split(key, 7)
    N, C_IN, C_OUT, H, W = 2, 4, 8, 16, 16

    x = jax.random.normal(kx, (N, C_IN, H, W), jnp.float32)

    # Deterministic synthetic parameter init. PyTorch shapes map as:
    #   conv1.weight (C_IN, 1, 3, 3)   -> wdw (3, 3, C_IN)    [wdw[kh,kw,c] = w[c,0,kh,kw]]
    #   conv2.weight (C_OUT, C_IN,1,1) -> wpw (C_IN, C_OUT)   [wpw[c,o]    = w[o,c,0,0]]
    wdw = 0.3 * jax.random.normal(k1, (3, 3, C_IN), jnp.float32)
    wpw = 0.3 * jax.random.normal(k2, (C_IN, C_OUT), jnp.float32)
    g1 = 1.0 + 0.1 * jax.random.normal(k3, (C_IN,), jnp.float32)
    b1 = 0.1 * jax.random.normal(k4, (C_IN,), jnp.float32)
    g2 = 1.0 + 0.1 * jax.random.normal(k5, (C_OUT,), jnp.float32)
    b2 = 0.1 * jax.random.normal(k6, (C_OUT,), jnp.float32)

    out = jax.jit(block_forward)(x, wdw, g1, b1, wpw, g2, b2)
    out = jax.block_until_ready(out)

    ref = reference_block(x, wdw, g1, b1, wpw, g2, b2)
    assert out.shape == (N, C_OUT, H // 2, W // 2), out.shape
    assert jnp.allclose(out, ref, rtol=1e-4, atol=1e-4), \
        float(jnp.max(jnp.abs(out - ref)))
    print("KERNEL_OK")
</pallas_src>

<mosaic_0001>
module attributes {stable_mosaic.version = 11 : i64} {
  func.func @_block_kernel(%arg0: memref<2x8x256xf32, #tpu.memory_space<vmem>>, %arg1: memref<1x256xf32, #tpu.memory_space<vmem>>, %arg2: memref<8x6xf32, #tpu.memory_space<vmem>>, %arg3: memref<4x1xf32, #tpu.memory_space<vmem>>, %arg4: memref<4x1xf32, #tpu.memory_space<vmem>>, %arg5: memref<8x4xf32, #tpu.memory_space<vmem>>, %arg6: memref<8x1xf32, #tpu.memory_space<vmem>>, %arg7: memref<8x1xf32, #tpu.memory_space<vmem>>, %arg8: memref<8x256xf32, #tpu.memory_space<vmem>>) attributes {dimension_semantics = [], scalar_prefetch = 0 : i64, scratch_operands = 0 : i64, tpu.core_type = #tpu.core_type<tc>} {
    %c0 = arith.constant 0 : index
    %c0_0 = arith.constant 0 : index
    %0 = vector.load %arg1[%c0, %c0_0] : memref<1x256xf32, #tpu.memory_space<vmem>>, vector<1x256xf32>
    %c0_1 = arith.constant 0 : index
    %c0_2 = arith.constant 0 : index
    %c0_3 = arith.constant 0 : index
    %1 = vector.load %arg0[%c0_1, %c0_2, %c0_3] : memref<2x8x256xf32, #tpu.memory_space<vmem>>, vector<1x8x256xf32>
    %2 = vector.shape_cast %1 : vector<1x8x256xf32> to vector<8x256xf32>
    %c1 = arith.constant 1 : index
    %c0_4 = arith.constant 0 : index
    %c0_5 = arith.constant 0 : index
    %3 = vector.load %arg0[%c1, %c0_4, %c0_5] : memref<2x8x256xf32, #tpu.memory_space<vmem>>, vector<1x8x256xf32>
    %4 = vector.shape_cast %3 : vector<1x8x256xf32> to vector<8x256xf32>
    %cst = arith.constant 0.000000e+00 : f32
    %5 = vector.broadcast %cst : f32 to vector<8x256xf32>
    %c255_i32 = arith.constant 255 : i32
    %6 = tpu.dynamic_rotate %2 by %c255_i32 dim 1 : vector<8x256xf32>, i32 -> vector<8x256xf32>
    %c0_6 = arith.constant 0 : index
    %c0_7 = arith.constant 0 : index
    %7 = vector.load %arg2[%c0_6, %c0_7] : memref<8x6xf32, #tpu.memory_space<vmem>>, vector<8x1xf32>
    %c0_8 = arith.constant 0 : index
    %c1_9 = arith.constant 1 : index
    %8 = vector.load %arg2[%c0_8, %c1_9] : memref<8x6xf32, #tpu.memory_space<vmem>>, vector<8x1xf32>
    %9 = vector.broadcast %7 : vector<8x1xf32> to vector<8x256xf32>
    %10 = arith.mulf %9, %2 : vector<8x256xf32>
    %11 = arith.addf %5, %10 : vector<8x256xf32>
    %12 = vector.broadcast %8 : vector<8x1xf32> to vector<8x256xf32>
    %13 = arith.mulf %12, %6 : vector<8x256xf32>
    %14 = arith.addf %11, %13 : vector<8x256xf32>
    %c255_i32_10 = arith.constant 255 : i32
    %15 = tpu.dynamic_rotate %4 by %c255_i32_10 dim 1 : vector<8x256xf32>, i32 -> vector<8x256xf32>
    %c0_11 = arith.constant 0 : index
    %c2 = arith.constant 2 : index
    %16 = vector.load %arg2[%c0_11, %c2] : memref<8x6xf32, #tpu.memory_space<vmem>>, vector<8x1xf32>
    %c0_12 = arith.constant 0 : index
    %c3 = arith.constant 3 : index
    %17 = vector.load %arg2[%c0_12, %c3] : memref<8x6xf32, #tpu.memory_space<vmem>>, vector<8x1xf32>
    %18 = vector.broadcast %16 : vector<8x1xf32> to vector<8x256xf32>
    %19 = arith.mulf %18, %4 : vector<8x256xf32>
    %20 = arith.addf %14, %19 : vector<8x256xf32>
    %21 = vector.broadcast %17 : vector<8x1xf32> to vector<8x256xf32>
    %22 = arith.mulf %21, %15 : vector<8x256xf32>
    %23 = arith.addf %20, %22 : vector<8x256xf32>
    %c247_i32 = arith.constant 247 : i32
    %24 = tpu.dynamic_rotate %2 by %c247_i32 dim 1 : vector<8x256xf32>, i32 -> vector<8x256xf32>
    %c246_i32 = arith.constant 246 : i32
    %25 = tpu.dynamic_rotate %2 by %c246_i32 dim 1 : vector<8x256xf32>, i32 -> vector<8x256xf32>
    %c0_13 = arith.constant 0 : index
    %c4 = arith.constant 4 : index
    %26 = vector.load %arg2[%c0_13, %c4] : memref<8x6xf32, #tpu.memory_space<vmem>>, vector<8x1xf32>
    %c0_14 = arith.constant 0 : index
    %c5 = arith.constant 5 : index
    %27 = vector.load %arg2[%c0_14, %c5] : memref<8x6xf32, #tpu.memory_space<vmem>>, vector<8x1xf32>
    %28 = vector.broadcast %26 : vector<8x1xf32> to vector<8x256xf32>
    %29 = arith.mulf %28, %24 : vector<8x256xf32>
    %30 = arith.addf %23, %29 : vector<8x256xf32>
    %31 = vector.broadcast %27 : vector<8x1xf32> to vector<8x256xf32>
    %32 = arith.mulf %31, %25 : vector<8x256xf32>
    %33 = arith.addf %30, %32 : vector<8x256xf32>
    %34 = vector.extract_strided_slice %33 {offsets = [0, 0], sizes = [4, 256], strides = [1, 1]} : vector<8x256xf32> to vector<4x256xf32>
    %35 = vector.extract_strided_slice %33 {offsets = [4, 0], sizes = [4, 256], strides = [1, 1]} : vector<8x256xf32> to vector<4x256xf32>
    %36 = arith.addf %34, %35 : vector<4x256xf32>
    %37 = vector.broadcast %0 : vector<1x256xf32> to vector<4x256xf32>
    %38 = arith.mulf %36, %37 : vector<4x256xf32>
    %cst_15 = arith.constant dense<0.000000e+00> : vector<4xf32>
    %39 = vector.multi_reduction <add>, %38, %cst_15 [1] : vector<4x256xf32> to vector<4xf32>
    %40 = vector.shape_cast %39 : vector<4xf32> to vector<4x1xf32>
    %41 = arith.mulf %38, %38 : vector<4x256xf32>
    %cst_16 = arith.constant dense<0.000000e+00> : vector<4xf32>
    %42 = vector.multi_reduction <add>, %41, %cst_16 [1] : vector<4x256xf32> to vector<4xf32>
    %43 = vector.shape_cast %42 : vector<4xf32> to vector<4x1xf32>
    %cst_17 = arith.constant 7.812500e-03 : f32
    %44 = vector.broadcast %cst_17 : f32 to vector<4x1xf32>
    %45 = arith.mulf %40, %44 : vector<4x1xf32>
    %cst_18 = arith.constant 7.812500e-03 : f32
    %46 = vector.broadcast %cst_18 : f32 to vector<4x1xf32>
    %47 = arith.mulf %43, %46 : vector<4x1xf32>
    %48 = arith.mulf %45, %45 : vector<4x1xf32>
    %49 = arith.subf %47, %48 : vector<4x1xf32>
    %50 = vector.broadcast %45 : vector<4x1xf32> to vector<4x256xf32>
    %51 = arith.subf %38, %50 : vector<4x256xf32>
    %cst_19 = arith.constant 9.99999974E-6 : f32
    %52 = vector.broadcast %cst_19 : f32 to vector<4x1xf32>
    %53 = arith.addf %49, %52 : vector<4x1xf32>
    %54 = math.rsqrt %53 : vector<4x1xf32>
    %55 = vector.broadcast %54 : vector<4x1xf32> to vector<4x256xf32>
    %56 = arith.mulf %51, %55 : vector<4x256xf32>
    %c0_20 = arith.constant 0 : index
    %c0_21 = arith.constant 0 : index
    %57 = vector.load %arg3[%c0_20, %c0_21] : memref<4x1xf32, #tpu.memory_space<vmem>>, vector<4x1xf32>
    %58 = vector.broadcast %57 : vector<4x1xf32> to vector<4x256xf32>
    %59 = arith.mulf %56, %58 : vector<4x256xf32>
    %c0_22 = arith.constant 0 : index
    %c0_23 = arith.constant 0 : index
    %60 = vector.load %arg4[%c0_22, %c0_23] : memref<4x1xf32, #tpu.memory_space<vmem>>, vector<4x1xf32>
    %61 = vector.broadcast %60 : vector<4x1xf32> to vector<4x256xf32>
    %62 = arith.addf %59, %61 : vector<4x256xf32>
    %cst_24 = arith.constant 0.000000e+00 : f32
    %63 = vector.broadcast %cst_24 : f32 to vector<4x256xf32>
    %64 = arith.maximumf %62, %63 : vector<4x256xf32>
    %65 = vector.broadcast %0 : vector<1x256xf32> to vector<4x256xf32>
    %66 = arith.mulf %64, %65 : vector<4x256xf32>
    %c0_25 = arith.constant 0 : index
    %c0_26 = arith.constant 0 : index
    %67 = vector.load %arg5[%c0_25, %c0_26] : memref<8x4xf32, #tpu.memory_space<vmem>>, vector<8x4xf32>
    %68 = vector.extract_strided_slice %67 {offsets = [0, 0], sizes = [8, 1], strides = [1, 1]} : vector<8x4xf32> to vector<8x1xf32>
    %69 = vector.extract_strided_slice %66 {offsets = [0, 0], sizes = [1, 256], strides = [1, 1]} : vector<4x256xf32> to vector<1x256xf32>
    %70 = vector.broadcast %68 : vector<8x1xf32> to vector<8x256xf32>
    %71 = vector.broadcast %69 : vector<1x256xf32> to vector<8x256xf32>
    %72 = arith.mulf %70, %71 : vector<8x256xf32>
    %73 = vector.extract_strided_slice %67 {offsets = [0, 1], sizes = [8, 1], strides = [1, 1]} : vector<8x4xf32> to vector<8x1xf32>
    %74 = vector.extract_strided_slice %66 {offsets = [1, 0], sizes = [1, 256], strides = [1, 1]} : vector<4x256xf32> to vector<1x256xf32>
    %75 = vector.broadcast %73 : vector<8x1xf32> to vector<8x256xf32>
    %76 = vector.broadcast %74 : vector<1x256xf32> to vector<8x256xf32>
    %77 = arith.mulf %75, %76 : vector<8x256xf32>
    %78 = arith.addf %72, %77 : vector<8x256xf32>
    %79 = vector.extract_strided_slice %67 {offsets = [0, 2], sizes = [8, 1], strides = [1, 1]} : vector<8x4xf32> to vector<8x1xf32>
    %80 = vector.extract_strided_slice %66 {offsets = [2, 0], sizes = [1, 256], strides = [1, 1]} : vector<4x256xf32> to vector<1x256xf32>
    %81 = vector.broadcast %79 : vector<8x1xf32> to vector<8x256xf32>
    %82 = vector.broadcast %80 : vector<1x256xf32> to vector<8x256xf32>
    %83 = arith.mulf %81, %82 : vector<8x256xf32>
    %84 = arith.addf %78, %83 : vector<8x256xf32>
    %85 = vector.extract_strided_slice %67 {offsets = [0, 3], sizes = [8, 1], strides = [1, 1]} : vector<8x4xf32> to vector<8x1xf32>
    %86 = vector.extract_strided_slice %66 {offsets = [3, 0], sizes = [1, 256], strides = [1, 1]} : vector<4x256xf32> to vector<1x256xf32>
    %87 = vector.broadcast %85 : vector<8x1xf32> to vector<8x256xf32>
    %88 = vector.broadcast %86 : vector<1x256xf32> to vector<8x256xf32>
    %89 = arith.mulf %87, %88 : vector<8x256xf32>
    %90 = arith.addf %84, %89 : vector<8x256xf32>
    %cst_27 = arith.constant dense<0.000000e+00> : vector<8xf32>
    %91 = vector.multi_reduction <add>, %90, %cst_27 [1] : vector<8x256xf32> to vector<8xf32>
    %92 = vector.shape_cast %91 : vector<8xf32> to vector<8x1xf32>
    %93 = arith.mulf %90, %90 : vector<8x256xf32>
    %cst_28 = arith.constant dense<0.000000e+00> : vector<8xf32>
    %94 = vector.multi_reduction <add>, %93, %cst_28 [1] : vector<8x256xf32> to vector<8xf32>
    %95 = vector.shape_cast %94 : vector<8xf32> to vector<8x1xf32>
    %cst_29 = arith.constant 7.812500e-03 : f32
    %96 = vector.broadcast %cst_29 : f32 to vector<8x1xf32>
    %97 = arith.mulf %92, %96 : vector<8x1xf32>
    %cst_30 = arith.constant 7.812500e-03 : f32
    %98 = vector.broadcast %cst_30 : f32 to vector<8x1xf32>
    %99 = arith.mulf %95, %98 : vector<8x1xf32>
    %100 = arith.mulf %97, %97 : vector<8x1xf32>
    %101 = arith.subf %99, %100 : vector<8x1xf32>
    %102 = vector.broadcast %97 : vector<8x1xf32> to vector<8x256xf32>
    %103 = arith.subf %90, %102 : vector<8x256xf32>
    %cst_31 = arith.constant 9.99999974E-6 : f32
    %104 = vector.broadcast %cst_31 : f32 to vector<8x1xf32>
    %105 = arith.addf %101, %104 : vector<8x1xf32>
    %106 = math.rsqrt %105 : vector<8x1xf32>
    %107 = vector.broadcast %106 : vector<8x1xf32> to vector<8x256xf32>
    %108 = arith.mulf %103, %107 : vector<8x256xf32>
    %c0_32 = arith.constant 0 : index
    %c0_33 = arith.constant 0 : index
    %109 = vector.load %arg6[%c0_32, %c0_33] : memref<8x1xf32, #tpu.memory_space<vmem>>, vector<8x1xf32>
    %110 = vector.broadcast %109 : vector<8x1xf32> to vector<8x256xf32>
    %111 = arith.mulf %108, %110 : vector<8x256xf32>
    %c0_34 = arith.constant 0 : index
    %c0_35 = arith.constant 0 : index
    %112 = vector.load %arg7[%c0_34, %c0_35] : memref<8x1xf32, #tpu.memory_space<vmem>>, vector<8x1xf32>
    %113 = vector.broadcast %112 : vector<8x1xf32> to vector<8x256xf32>
    %114 = arith.addf %111, %113 : vector<8x256xf32>
    %cst_36 = arith.constant 0.000000e+00 : f32
    %115 = vector.broadcast %cst_36 : f32 to vector<8x256xf32>
    %116 = arith.maximumf %114, %115 : vector<8x256xf32>
    %c0_37 = arith.constant 0 : index
    %c0_38 = arith.constant 0 : index
    %117 = vector.load %arg8[%c0_37, %c0_38] : memref<8x256xf32, #tpu.memory_space<vmem>>, vector<8x256xf32>
    tpu.vector_store %arg8[%c0_37, %c0_38], %116 {strides = array<i32>} : memref<8x256xf32, #tpu.memory_space<vmem>>, vector<8x256xf32>,
    return
  }
}

</mosaic_0001>

<bundles_post_ra>
// kernel: block_forward.1
= control target key start
LH: loop header
LB: loop body
LE: loop exit
PB: predicated region body
PF: predicated region fallthrough
CT: control target
= control target key end

     0   :  { %v311_v0 = vmov 2   ;;  %v312_v1 = vmov 0   ;;  %v313_v3 = vmov 3   ;;  %v314_v4 = vmov 1   ;;  %s315_s11 = smov 127   ;;  %s318_s13 = smov 119   ;;  %s432_s2 = inlined_call_operand.vmem [shape: f32[8,6], index: 2, kind: input, shape index: {}]   ;;  %s433_s0 = inlined_call_operand.vmem [shape: f32[2,8,256], index: 0, kind: input, shape index: {}]   ;;  %s434_s4 = inlined_call_operand.vmem [shape: f32[4,1], index: 4, kind: input, shape index: {}]   ;;  %s435_s5 = inlined_call_operand.vmem [shape: f32[8,4], index: 5, kind: input, shape index: {}]   ;;  %s436_s1 = inlined_call_operand.vmem [shape: f32[1,256], index: 1, kind: input, shape index: {}]   ;;  %s437_s3 = inlined_call_operand.vmem [shape: f32[4,1], index: 3, kind: input, shape index: {}]   ;;  %s438_s6 = inlined_call_operand.vmem [shape: f32[8,1], index: 6, kind: input, shape index: {}]   ;;  %s439_s7 = inlined_call_operand.vmem [shape: f32[8,1], index: 7, kind: input, shape index: {}]   ;;  %s440_s8 = inlined_call_operand.vmem [shape: f32[8,256], index: 8, kind: output, shape index: {}]  }
   0x1   :  { %297 = vset.pattern.permute.xlu1 %v311_v0  ;;  %295 = vset.pattern.permute.xlu0 %v312_v1  ;;  %v44_v2 = vld [vmem:[%s432_s2] sm:$0xff]  ;;  %v31_v6 = vld [vmem:[%s433_s0 + $0x8] sm:$0xff]  ;;  %v316_v7 = vmov 4   ;;  %v317_v8 = vmov 5   ;;  %v284_v9 = vld [vmem:[%s433_s0 + $0x10] sm:$0xff]  ;;  %s319_s16 = smov 118   ;;  %v39_v17 = vlaneseq }
   0x2   :  { %69 = vperm.xlu1 %297, %v44_v2   ;;  %47 = vperm.xlu0 %295, %v44_v2   ;;  %v30_v5 = vld [vmem:[%s433_s0] sm:$0xff]  ;;  %v285_v10 = vld [vmem:[%s433_s0 + $0x18] sm:$0xff]  ;;  %vm135_vm3 = vcmask 1043456  }
   0x3   :  { %v166_v11 = vld [vmem:[%s434_s4] sm:$0xf]  ;;  %v40_v18 = vand.u32 127, %v39_v17  ;;  %v394_v41 = vshrl.u32 %v39_v17, 7 }
   0x4   :  { %v390_v12 = vld [vmem:[%s435_s5] sm:$0xff] }
   0x5   :  { %vm41_vm0 = vcmp.lt.s32.totalorder %v40_v18, 127  ;;  %vm88_vm1 = vcmp.lt.s32.totalorder %v40_v18, 119  ;;  %vm95_vm2 = vcmp.lt.s32.totalorder %v40_v18, 118  ;;  %v397_v54 = vsub.s32 0, %v394_v41  ;;  %v29_v60 = vld [vmem:[%s436_s1] sm:$0x3] }
   0x6   :  { %298 = vset.pattern.permute.xlu1 %v313_v3  ;;  %296 = vset.pattern.permute.xlu0 %v314_v4  ;;  %v400_v55 = vsub.s32 1, %v394_v41  ;;  %v158_v18 = vld [vmem:[%s437_s3] sm:$0xf] }
   0x7   :  { %77 = vperm.xlu1 %298, %v44_v2   ;;  %55 = vperm.xlu0 %296, %v44_v2  }
   0xb   :  { %35 = vrot.lane.b32.xlu1 %v30_v5, %s315_s11  ;;  %37 = vrot.lane.b32.xlu0 %v31_v6, %s315_s11 }
   0xc   :  { %299 = vset.pattern.permute.xlu1 %v316_v7  ;;  %300 = vset.pattern.permute.xlu0 %v317_v8 }
   0xf   :  { %99 = vperm.xlu1 %299, %v44_v2   ;;  %107 = vperm.xlu0 %300, %v44_v2   ;;  %v126_v2 = vrot.slane %v29_v60, %v397_v54 }
  0x13   :  { %62 = vrot.lane.b32.xlu1 %v284_v9, %s315_s11  ;;  %84 = vrot.lane.b32.xlu0 %v30_v5, %s318_s13 }
  0x14   :  { %302 = vset.pattern.permute.xlu1 %v312_v1  ;;  %301 = vset.pattern.permute.xlu0 %v312_v1 }
  0x17   :  { %64 = vrot.lane.b32.xlu1 %v285_v10, %s315_s11  ;;  %91 = vrot.lane.b32.xlu0 %v30_v5, %s319_s16 }
  0x1b   :  { %86 = vrot.lane.b32.xlu1 %v31_v6, %s318_s13 }
  0x1f   :  { %93 = vrot.lane.b32.xlu1 %v31_v6, %s319_s16 }
  0x23   :  { %169 = vperm.xlu1 %302, %v166_v11  }
  0x27   :  { %181 = vperm.xlu1 %302, %v390_v12  }
  0x2b   :  { %303 = vset.pattern.permute.xlu1 %v314_v4  ;;  %v130_v4 = vrot.slane %v29_v60, %v400_v55 }
  0x2c   :  { %195 = vperm.xlu1 %303, %v390_v12  }
  0x30   :  { %304 = vset.pattern.permute.xlu1 %v311_v0 }
  0x81   :  { %v70_v13 = vpop.permute.xlu1 %69  ;;  %v48_v14 = vpop.permute.xlu0 %47 }
  0x82   :  { %v50_v28 = vmul.f32 %v48_v14, %v30_v5  ;;  %v51_v29 = vmul.f32 %v48_v14, %v31_v6  ;;  %v72_v36 = vmul.f32 %v284_v9, %v70_v13  ;;  %v73_v37 = vmul.f32 %v285_v10, %v70_v13 }
  0x86   :  { %v78_v15 = vpop.permute.xlu1 %77  ;;  %v56_v16 = vpop.permute.xlu0 %55 }
  0x8a   :  { %v36_v19 = vpop.permute.xlu1 %35  ;;  %v38_v20 = vpop.permute.xlu0 %37 }
  0x8b   :  { %v42_v23 = vsel %vm41_vm0, %v36_v19, %v38_v20  ;;  %v43_v24 = vsel %vm41_vm0, %v38_v20, %v36_v19 }
  0x8c   :  { %v58_v26 = vmul.f32 %v56_v16, %v42_v23  ;;  %v59_v27 = vmul.f32 %v56_v16, %v43_v24 }
  0x8e   :  { %v100_v21 = vpop.permute.xlu1 %99  ;;  %v108_v22 = vpop.permute.xlu0 %107  ;;  %v60_v34 = vadd.f32 %v58_v26, %v50_v28  ;;  %v61_v35 = vadd.f32 %v59_v27, %v51_v29 }
  0x90   :  { %v75_v44 = vadd.f32 %v73_v37, %v61_v35  ;;  %v74_v45 = vadd.f32 %v72_v36, %v60_v34 }
  0x92   :  { %v63_v25 = vpop.permute.xlu1 %62  ;;  %v85_v31 = vpop.permute.xlu0 %84 }
  0x96   :  { %v65_v30 = vpop.permute.xlu1 %64  ;;  %v92_v48 = vpop.permute.xlu0 %91 }
  0x97   :  { %v66_v32 = vsel %vm41_vm0, %v63_v25, %v65_v30  ;;  %v67_v33 = vsel %vm41_vm0, %v65_v30, %v63_v25 }
  0x98   :  { %v80_v38 = vmul.f32 %v78_v15, %v66_v32  ;;  %v81_v39 = vmul.f32 %v78_v15, %v67_v33 }
  0x9a   :  { %v87_v40 = vpop.permute.xlu1 %86  ;;  %v82_v49 = vadd.f32 %v80_v38, %v74_v45  ;;  %v83_v50 = vadd.f32 %v81_v39, %v75_v44  ;;  %v216_v38 = vsub.s32 2, %v394_v41 }
  0x9b   :  { %v89_v42 = vsel %vm88_vm1, %v85_v31, %v87_v40  ;;  %v90_v43 = vsel %vm88_vm1, %v87_v40, %v85_v31  ;;  %v232_v40 = vsub.s32 3, %v394_v41 }
  0x9c   :  { %v102_v46 = vmul.f32 %v100_v21, %v89_v42  ;;  %v103_v47 = vmul.f32 %v100_v21, %v90_v43 }
  0x9e   :  { %v94_v51 = vpop.permute.xlu1 %93  ;;  %v104_v56 = vadd.f32 %v102_v46, %v82_v49  ;;  %v105_v57 = vadd.f32 %v103_v47, %v83_v50 }
  0x9f   :  { %v96_v52 = vsel %vm95_vm2, %v92_v48, %v94_v51  ;;  %v97_v53 = vsel %vm95_vm2, %v94_v51, %v92_v48 }
  0xa0   :  { %v110_v58 = vmul.f32 %v108_v22, %v96_v52  ;;  %v111_v59 = vmul.f32 %v108_v22, %v97_v53 }
  0xa2   :  { %v112_v61 = vadd.f32 %v110_v58, %v104_v56  ;;  %v113_v62 = vadd.f32 %v111_v59, %v105_v57  ;;  %v170_v19 = vpop.permute.xlu1 %169 }
  0xa4   :  { %v116_v63 = vrot.slane %v112_v61, 4  ;;  %v117_v0 = vrot.slane %v113_v62, 4 }
  0xa6   :  { %v120_v5 = vadd.f32 %v116_v63, %v112_v61  ;;  %v121_v6 = vadd.f32 %v117_v0, %v113_v62  ;;  %v182_v20 = vpop.permute.xlu1 %181 }
  0xa8   :  { %v133_v7 = vmul.f32 %v126_v2, %v120_v5  ;;  %v134_v8 = vmul.f32 %v130_v4, %v121_v6 }
  0xaa   :  { %v136_v9 = vsel %vm135_vm3, %v133_v7, 0.0  ;;  %v137_v10 = vsel %vm135_vm3, %v134_v8, 0.0  ;;  %v141_v11 = vmul.f32 %v133_v7, %v133_v7  ;;  %v142_v13 = vmul.f32 %v134_v8, %v134_v8 }
  0xab   :  { %v138_v14 = vadd.f32 %v137_v10, %v136_v9  ;;  %v196_v21 = vpop.permute.xlu1 %195  ;;  %v268_v9 = vld [vmem:[%s439_s7] sm:$0xff] }
  0xac   :  { %v143_v15 = vsel %vm135_vm3, %v141_v11, 0.0  ;;  %v144_v16 = vsel %vm135_vm3, %v142_v13, 0.0 }
  0xad   :  { %139 = vadd.xlane.f32.xlu0 %v138_v14  ;;  %v145_v17 = vadd.f32 %v144_v16, %v143_v15 }
  0xaf   :  { %146 = vadd.xlane.f32.xlu1 %v145_v17 }
  0xc0   :  { %211 = vperm.xlu1 %304, %v390_v12  }
  0xc3   :  { %161 = vperm.xlu0 %301, %v158_v18  }
  0xc4   :  { %305 = vset.pattern.permute.xlu1 %v313_v3 }
  0xc5   :  { %227 = vperm.xlu1 %305, %v390_v12  }
  0xc9   :  { %306 = vset.pattern.permute.xlu1 %v312_v1 }
 0x13a   :  { %v140_v22 = vpop.xlane.xlu0 %139 }
 0x13b   :  { %v148_v23 = vmul.f32 0.0078125, %v140_v22 }
 0x13c   :  { %v147_v24 = vpop.xlane.xlu1 %146 }
 0x13d   :  { %v149_v25 = vmul.f32 0.0078125, %v147_v24  ;;  %v150_v26 = vmul.f32 %v148_v23, %v148_v23  ;;  %v152_v29 = vsub.f32 %v133_v7, %v148_v23  ;;  %v153_v30 = vsub.f32 %v134_v8, %v148_v23  ;;  %v260_v8 = vld [vmem:[%s438_s6] sm:$0xff] }
 0x13f   :  { %v151_v27 = vsub.f32 %v149_v25, %v150_v26 }
 0x140   :  { %v212_v39 = vpop.permute.xlu1 %211 }
 0x141   :  { %v154_v28 = vadd.f32 1e-05, %v151_v27 }
 0x142   :  { %v162_v32 = vpop.permute.xlu0 %161 }
 0x143   :  { %307 = vrsqrt.f32 %v154_v28 }
 0x144   :  { %v228_v58 = vpop.permute.xlu1 %227 }
 0x14d   :  { %v308_v31 = vpop.eup %307 }
 0x14e   :  { %v156_v3 = vmul.f32 %v308_v31, %v152_v29  ;;  %v157_v33 = vmul.f32 %v308_v31, %v153_v30 }
 0x150   :  { %v164_v12 = vmul.f32 %v162_v32, %v156_v3  ;;  %v165_v34 = vmul.f32 %v162_v32, %v157_v33 }
 0x152   :  { %v172_v1 = vadd.f32 %v170_v19, %v164_v12  ;;  %v173_v35 = vadd.f32 %v170_v19, %v165_v34 }
 0x154   :  { %v174_v36 = vmax.f32 %v172_v1, 0.0  ;;  %v175_v37 = vmax.f32 %v173_v35, 0.0 }
 0x156   :  { %v176_v42 = vmul.f32 %v174_v36, %v126_v2  ;;  %v177_v43 = vmul.f32 %v175_v37, %v130_v4 }
 0x158   :  { %v187_v44 = vrot.slane %v176_v42, %v397_v54  ;;  %v191_v45 = vrot.slane %v177_v43, %v397_v54  ;;  %v201_v46 = vrot.slane %v176_v42, %v400_v55  ;;  %v205_v47 = vrot.slane %v177_v43, %v400_v55 }
 0x159   :  { %v217_v48 = vrot.slane %v176_v42, %v216_v38  ;;  %v221_v49 = vrot.slane %v177_v43, %v216_v38  ;;  %v233_v50 = vrot.slane %v176_v42, %v232_v40  ;;  %v237_v51 = vrot.slane %v177_v43, %v232_v40 }
 0x15a   :  { %v192_v52 = vmul.f32 %v187_v44, %v182_v20  ;;  %v193_v53 = vmul.f32 %v191_v45, %v182_v20  ;;  %v206_v56 = vmul.f32 %v201_v46, %v196_v21  ;;  %v207_v57 = vmul.f32 %v205_v47, %v196_v21 }
 0x15b   :  { %v222_v60 = vmul.f32 %v217_v48, %v212_v39  ;;  %v223_v61 = vmul.f32 %v221_v49, %v212_v39  ;;  %v238_v54 = vmul.f32 %v233_v50, %v228_v58  ;;  %v239_v0 = vmul.f32 %v237_v51, %v228_v58 }
 0x15c   :  { %v208_v41 = vadd.f32 %v206_v56, %v192_v52  ;;  %v209_v59 = vadd.f32 %v207_v57, %v193_v53 }
 0x15e   :  { %v224_v62 = vadd.f32 %v222_v60, %v208_v41  ;;  %v225_v63 = vadd.f32 %v223_v61, %v209_v59 }
 0x160   :  { %v240_v2 = vadd.f32 %v238_v54, %v224_v62  ;;  %v241_v4 = vadd.f32 %v239_v0, %v225_v63 }
 0x162   :  { %v242_v55 = vadd.f32 %v241_v4, %v240_v2  ;;  %v245_v5 = vmul.f32 %v240_v2, %v240_v2  ;;  %v246_v6 = vmul.f32 %v241_v4, %v241_v4 }
 0x164   :  { %243 = vadd.xlane.f32.xlu1 %v242_v55  ;;  %v247_v7 = vadd.f32 %v246_v6, %v245_v5 }
 0x166   :  { %248 = vadd.xlane.f32.xlu0 %v247_v7 }
 0x175   :  { %263 = vperm.xlu1 %306, %v260_v8  }
 0x17c   :  { %271 = vperm.xlu0 %301, %v268_v9  }
 0x1f1   :  { %v244_v10 = vpop.xlane.xlu1 %243 }
 0x1f2   :  { %v250_v11 = vmul.f32 0.0078125, %v244_v10 }
 0x1f3   :  { %v249_v13 = vpop.xlane.xlu0 %248 }
 0x1f4   :  { %v251_v14 = vmul.f32 0.0078125, %v249_v13  ;;  %v252_v15 = vmul.f32 %v250_v11, %v250_v11  ;;  %v254_v18 = vsub.f32 %v240_v2, %v250_v11  ;;  %v255_v19 = vsub.f32 %v241_v4, %v250_v11 }
 0x1f5   :  { %v264_v21 = vpop.permute.xlu1 %263 }
 0x1f6   :  { %v253_v16 = vsub.f32 %v251_v14, %v252_v15 }
 0x1f8   :  { %v256_v17 = vadd.f32 1e-05, %v253_v16 }
 0x1fa   :  { %309 = vrsqrt.f32 %v256_v17 }
 0x1fb   :  { %v272_v26 = vpop.permute.xlu0 %271 }
 0x204   :  { %v310_v20 = vpop.eup %309 }
 0x205   :  { %v258_v22 = vmul.f32 %v310_v20, %v254_v18  ;;  %v259_v23 = vmul.f32 %v310_v20, %v255_v19 }
 0x207   :  { %v266_v24 = vmul.f32 %v264_v21, %v258_v22  ;;  %v267_v25 = vmul.f32 %v264_v21, %v259_v23 }
 0x209   :  { %v274_v27 = vadd.f32 %v272_v26, %v266_v24  ;;  %v275_v28 = vadd.f32 %v272_v26, %v267_v25 }
 0x20b   :  { %v276_v29 = vmax.f32 %v274_v27, 0.0  ;;  %v277_v30 = vmax.f32 %v275_v28, 0.0 }
 0x20d   :  { %278 = vst [vmem:[%s440_s8] sm:$0xff] %v276_v29  ;;  %279 = vst [vmem:[%s440_s8 + $0x8] sm:$0xff] %v277_v30 }

</bundles_post_ra>
